<compile_context>
chip_gen: v7x
topology: tpu7x:2x2x1
jax: 0.10.0
libtpu: 0.0.40
codegen_flags: <defaults>
</compile_context>

<pallas_src>
import functools

import jax
import jax.numpy as jnp
from jax import lax
from jax.experimental import pallas as pl
from jax.experimental.pallas import tpu as pltpu

NUM_REG_FCS = 2     # typical DETR3D head setting (head.num_reg_fcs)
EMBED_DIMS = 32     # small test size; real head uses 256 — kernel is generic in E
OUT_DIM = 8         # -> reshape (bs, 4, 2)
TB_MAX = 4096       # batch tile: (TB,32)bf16 + (8,TB)f32 blocks + scratch ≈ a few MiB


def _round_up(x, m):
    return (x + m - 1) // m * m


def _wp_refine_kernel(x_ref, w0_ref, b0_ref, w1_ref, b1_ref, w2_ref, b2_ref,
                      o_ref):
    """One batch tile.  Activations are kept as (features, TB): batch on the
    lane axis -> packed VPU work and a lane-dense (8, TB) output store."""
    x = x_ref[...]                                        # (TB, E), compute dtype

    # h0 = W0 @ x^T : contract the E axis of both operands -> (E, TB), f32 acc.
    h = lax.dot_general(w0_ref[...], x,
                        dimension_numbers=(((1,), (1,)), ((), ())),
                        preferred_element_type=jnp.float32)
    h = jnp.maximum(h + b0_ref[...], 0.0)                 # f32 bias + ReLU

    h = lax.dot_general(w1_ref[...], h.astype(w1_ref.dtype),
                        dimension_numbers=(((1,), (0,)), ((), ())),
                        preferred_element_type=jnp.float32)
    h = jnp.maximum(h + b1_ref[...], 0.0)

    out = lax.dot_general(w2_ref[...], h.astype(w2_ref.dtype),
                          dimension_numbers=(((1,), (0,)), ((), ())),
                          preferred_element_type=jnp.float32)
    o_ref[...] = (out + b2_ref[...]).astype(o_ref.dtype)  # (8, TB) lane-dense


def wp_refine_forward(cls_emb, params, *, compute_dtype=jnp.bfloat16,
                      tb_max=TB_MAX):
    """cls_emb: (bs, embed_dims) float32 -> (bs, 4, 2) float32."""
    bs, e = cls_emb.shape
    (w0, b0), (w1, b1), (w2, b2) = params
    assert w0.shape == (e, e) and w1.shape == (e, e) and w2.shape == (OUT_DIM, e)

    # Batch tile: multiple of 128 so the (8, TB) output block is lane-dense.
    tb = min(tb_max, _round_up(bs, 128))
    bs_pad = _round_up(bs, tb)
    grid = (bs_pad // tb,)

    x = cls_emb.astype(compute_dtype)
    if bs_pad != bs:
        x = jnp.pad(x, ((0, bs_pad - bs), (0, 0)))

    w0c, w1c, w2c = (w.astype(compute_dtype) for w in (w0, w1, w2))
    b0c, b1c, b2c = (b.astype(jnp.float32) for b in (b0, b1, b2))

    itemsize = jnp.dtype(compute_dtype).itemsize
    cost = pl.CostEstimate(
        flops=2 * bs_pad * (NUM_REG_FCS * e * e + e * OUT_DIM),
        transcendentals=0,
        bytes_accessed=(bs_pad * e * itemsize                 # cls_emb read
                        + bs_pad * OUT_DIM * 4                # output write
                        + (NUM_REG_FCS * e * e + OUT_DIM * e) * itemsize
                        + (NUM_REG_FCS * e + OUT_DIM) * 4))   # weights + biases

    const = lambda i: (0, 0)   # weights/biases resident across grid steps
    out_t = pl.pallas_call(
        _wp_refine_kernel,
        out_shape=jax.ShapeDtypeStruct((OUT_DIM, bs_pad), jnp.float32),
        grid_spec=pltpu.PrefetchScalarGridSpec(
            num_scalar_prefetch=0,
            grid=grid,
            in_specs=[
                pl.BlockSpec((tb, e), lambda i: (i, 0)),          # cls_emb tile
                pl.BlockSpec((e, e), const),                      # w0
                pl.BlockSpec((e, 1), const),                      # b0
                pl.BlockSpec((e, e), const),                      # w1
                pl.BlockSpec((e, 1), const),                      # b1
                pl.BlockSpec((OUT_DIM, e), const),                # w2
                pl.BlockSpec((OUT_DIM, 1), const),                # b2
            ],
            out_specs=pl.BlockSpec((OUT_DIM, tb), lambda i: (0, i)),
        ),
        compiler_params=pltpu.CompilerParams(
            dimension_semantics=("parallel",),        # megacore-shard batch (v7x)
            vmem_limit_bytes=32 * 1024 * 1024),
        cost_estimate=cost,
    )(x, w0c, b0c, w1c, b1c, w2c, b2c)

    # (8, bs_pad) lane-dense slab -> (bs, 4, 2).  Tiny transpose: layout plumbing.
    return out_t[:, :bs].T.reshape(bs, 4, 2)


def init_params(key, embed_dims=EMBED_DIMS, num_reg_fcs=NUM_REG_FCS):
    """Deterministic synthetic init (not a checkpoint load).
    Weights in PyTorch-native (out, in) layout, biases as (out, 1) columns."""
    params = []
    dims = [(embed_dims, embed_dims)] * num_reg_fcs + [(OUT_DIM, embed_dims)]
    for (dout, din) in dims:
        key, kw, kb = jax.random.split(key, 3)
        w = jax.random.normal(kw, (dout, din), jnp.float32) * 0.2
        b = jax.random.normal(kb, (dout, 1), jnp.float32) * 0.1
        params.append((w, b))
    return params


def wp_refine_reference(cls_emb, params, compute_dtype=jnp.float32):
    """Pure-JAX reference mirroring the kernel's precision choices."""
    h = cls_emb.astype(compute_dtype)
    for i, (w, b) in enumerate(params):
        h = jnp.dot(h, w.T.astype(compute_dtype),
                    preferred_element_type=jnp.float32) + b[:, 0]
        if i < len(params) - 1:
            h = jnp.maximum(h, 0.0).astype(compute_dtype)
    return h.reshape(cls_emb.shape[0], 4, 2)


if __name__ == "__main__":
    key = jax.random.PRNGKey(0)
    key, kparam = jax.random.split(key)
    params = init_params(kparam)

    fwd_bf16 = jax.jit(functools.partial(wp_refine_forward,
                                         compute_dtype=jnp.bfloat16))
    fwd_f32 = jax.jit(functools.partial(wp_refine_forward,
                                        compute_dtype=jnp.float32))

    # bs=8: tiny (single padded tile); bs=300: tail padding; bs=9000: multi-step grid.
    for bs in (8, 300, 9000):
        key, kx = jax.random.split(key)
        cls_emb = jax.random.normal(kx, (bs, EMBED_DIMS), jnp.float32)

        out32 = jax.block_until_ready(fwd_f32(cls_emb, params))
        ref32 = wp_refine_reference(cls_emb, params, jnp.float32)
        assert out32.shape == (bs, 4, 2), out32.shape
        assert jnp.allclose(out32, ref32, atol=1e-4, rtol=1e-4), "f32 mismatch"

        out16 = jax.block_until_ready(fwd_bf16(cls_emb, params))
        ref16 = wp_refine_reference(cls_emb, params, jnp.bfloat16)
        assert out16.shape == (bs, 4, 2), out16.shape
        assert jnp.allclose(out16, ref16, atol=1e-2, rtol=1e-2), "bf16 mismatch"

    print("KERNEL_OK")
</pallas_src>

<mosaic_0001>
module attributes {stable_mosaic.version = 11 : i64} {
  func.func @_wp_refine_kernel(%arg0: i32, %arg1: memref<128x32xf32, #tpu.memory_space<vmem>>, %arg2: memref<32x32xf32, #tpu.memory_space<vmem>>, %arg3: memref<32x1xf32, #tpu.memory_space<vmem>>, %arg4: memref<32x32xf32, #tpu.memory_space<vmem>>, %arg5: memref<32x1xf32, #tpu.memory_space<vmem>>, %arg6: memref<8x32xf32, #tpu.memory_space<vmem>>, %arg7: memref<8x1xf32, #tpu.memory_space<vmem>>, %arg8: memref<8x128xf32, #tpu.memory_space<vmem>>) attributes {dimension_semantics = [#tpu.dimension_semantics<parallel>], iteration_bounds = array<i64: 1>, scalar_prefetch = 0 : i64, scratch_operands = 0 : i64, tpu.core_type = #tpu.core_type<tc>, window_params = [{transform_indices = @transform_0, window_bounds = array<i64: 128, 32>}, {pipeline_mode = #tpu.pipeline_mode<synchronous>, transform_indices = @transform_1, window_bounds = array<i64: 32, 32>}, {pipeline_mode = #tpu.pipeline_mode<synchronous>, transform_indices = @transform_2, window_bounds = array<i64: 32, 1>}, {pipeline_mode = #tpu.pipeline_mode<synchronous>, transform_indices = @transform_3, window_bounds = array<i64: 32, 32>}, {pipeline_mode = #tpu.pipeline_mode<synchronous>, transform_indices = @transform_4, window_bounds = array<i64: 32, 1>}, {pipeline_mode = #tpu.pipeline_mode<synchronous>, transform_indices = @transform_5, window_bounds = array<i64: 8, 32>}, {pipeline_mode = #tpu.pipeline_mode<synchronous>, transform_indices = @transform_6, window_bounds = array<i64: 8, 1>}, {transform_indices = @transform_7, window_bounds = array<i64: 8, 128>}]} {
    %c0 = arith.constant 0 : index
    %c0_0 = arith.constant 0 : index
    %0 = vector.load %arg1[%c0, %c0_0] : memref<128x32xf32, #tpu.memory_space<vmem>>, vector<128x32xf32>
    %c0_1 = arith.constant 0 : index
    %c0_2 = arith.constant 0 : index
    %1 = vector.load %arg2[%c0_1, %c0_2] : memref<32x32xf32, #tpu.memory_space<vmem>>, vector<32x32xf32>
    %cst = arith.constant dense<0.000000e+00> : vector<32x128xf32>
    %2 = tpu.matmul %1, %0, %cst {dimension_numbers = #tpu.dot_dimension_numbers<[1], [1], [0], [0], [0, 0, 1, 0], [], []>} : vector<32x32xf32>, vector<128x32xf32>, vector<32x128xf32> -> vector<32x128xf32>
    %c0_3 = arith.constant 0 : index
    %c0_4 = arith.constant 0 : index
    %3 = vector.load %arg3[%c0_3, %c0_4] : memref<32x1xf32, #tpu.memory_space<vmem>>, vector<32x1xf32>
    %4 = vector.broadcast %3 : vector<32x1xf32> to vector<32x128xf32>
    %5 = arith.addf %2, %4 : vector<32x128xf32>
    %cst_5 = arith.constant 0.000000e+00 : f32
    %6 = vector.broadcast %cst_5 : f32 to vector<32x128xf32>
    %7 = arith.maximumf %5, %6 : vector<32x128xf32>
    %c0_6 = arith.constant 0 : index
    %c0_7 = arith.constant 0 : index
    %8 = vector.load %arg4[%c0_6, %c0_7] : memref<32x32xf32, #tpu.memory_space<vmem>>, vector<32x32xf32>
    %cst_8 = arith.constant dense<0.000000e+00> : vector<32x128xf32>
    %9 = tpu.matmul %8, %7, %cst_8 {dimension_numbers = #tpu.dot_dimension_numbers<[1], [0], [0], [1], [0, 0, 1, 1], [], []>} : vector<32x32xf32>, vector<32x128xf32>, vector<32x128xf32> -> vector<32x128xf32>
    %c0_9 = arith.constant 0 : index
    %c0_10 = arith.constant 0 : index
    %10 = vector.load %arg5[%c0_9, %c0_10] : memref<32x1xf32, #tpu.memory_space<vmem>>, vector<32x1xf32>
    %11 = vector.broadcast %10 : vector<32x1xf32> to vector<32x128xf32>
    %12 = arith.addf %9, %11 : vector<32x128xf32>
    %cst_11 = arith.constant 0.000000e+00 : f32
    %13 = vector.broadcast %cst_11 : f32 to vector<32x128xf32>
    %14 = arith.maximumf %12, %13 : vector<32x128xf32>
    %c0_12 = arith.constant 0 : index
    %c0_13 = arith.constant 0 : index
    %15 = vector.load %arg6[%c0_12, %c0_13] : memref<8x32xf32, #tpu.memory_space<vmem>>, vector<8x32xf32>
    %cst_14 = arith.constant dense<0.000000e+00> : vector<8x128xf32>
    %16 = tpu.matmul %15, %14, %cst_14 {dimension_numbers = #tpu.dot_dimension_numbers<[1], [0], [0], [1], [0, 0, 1, 1], [], []>} : vector<8x32xf32>, vector<32x128xf32>, vector<8x128xf32> -> vector<8x128xf32>
    %c0_15 = arith.constant 0 : index
    %c0_16 = arith.constant 0 : index
    %17 = vector.load %arg7[%c0_15, %c0_16] : memref<8x1xf32, #tpu.memory_space<vmem>>, vector<8x1xf32>
    %18 = vector.broadcast %17 : vector<8x1xf32> to vector<8x128xf32>
    %19 = arith.addf %16, %18 : vector<8x128xf32>
    %c0_17 = arith.constant 0 : index
    %c0_18 = arith.constant 0 : index
    %20 = vector.load %arg8[%c0_17, %c0_18] : memref<8x128xf32, #tpu.memory_space<vmem>>, vector<8x128xf32>
    tpu.vector_store %arg8[%c0_17, %c0_18], %19 {strides = array<i32>} : memref<8x128xf32, #tpu.memory_space<vmem>>, vector<8x128xf32>,
    return
  }
  func.func @transform_0(%arg0: i32) -> (i32, i32) {
    %c0_i32 = arith.constant 0 : i32
    %c0_i32_0 = arith.constant 0 : i32
    return %arg0, %c0_i32 : i32, i32
  }
  func.func @transform_1(%arg0: i32) -> (i32, i32) {
    %c0_i32 = arith.constant 0 : i32
    %c0_i32_0 = arith.constant 0 : i32
    %c0_i32_1 = arith.constant 0 : i32
    return %c0_i32, %c0_i32_0 : i32, i32
  }
  func.func @transform_2(%arg0: i32) -> (i32, i32) {
    %c0_i32 = arith.constant 0 : i32
    %c0_i32_0 = arith.constant 0 : i32
    %c0_i32_1 = arith.constant 0 : i32
    return %c0_i32, %c0_i32_0 : i32, i32
  }
  func.func @transform_3(%arg0: i32) -> (i32, i32) {
    %c0_i32 = arith.constant 0 : i32
    %c0_i32_0 = arith.constant 0 : i32
    %c0_i32_1 = arith.constant 0 : i32
    return %c0_i32, %c0_i32_0 : i32, i32
  }
  func.func @transform_4(%arg0: i32) -> (i32, i32) {
    %c0_i32 = arith.constant 0 : i32
    %c0_i32_0 = arith.constant 0 : i32
    %c0_i32_1 = arith.constant 0 : i32
    return %c0_i32, %c0_i32_0 : i32, i32
  }
  func.func @transform_5(%arg0: i32) -> (i32, i32) {
    %c0_i32 = arith.constant 0 : i32
    %c0_i32_0 = arith.constant 0 : i32
    %c0_i32_1 = arith.constant 0 : i32
    return %c0_i32, %c0_i32_0 : i32, i32
  }
  func.func @transform_6(%arg0: i32) -> (i32, i32) {
    %c0_i32 = arith.constant 0 : i32
    %c0_i32_0 = arith.constant 0 : i32
    %c0_i32_1 = arith.constant 0 : i32
    return %c0_i32, %c0_i32_0 : i32, i32
  }
  func.func @transform_7(%arg0: i32) -> (i32, i32) {
    %c0_i32 = arith.constant 0 : i32
    %c0_i32_0 = arith.constant 0 : i32
    return %c0_i32, %arg0 : i32, i32
  }
}

</mosaic_0001>

<bundles_post_ra>
// kernel: wp_refine_forward.1
= control target key start
LH: loop header
LB: loop body
LE: loop exit
PB: predicated region body
PF: predicated region fallthrough
CT: control target
= control target key end

     0   :  { %vm71_vm0 = vcmask 261120   ;;  %v659_v6 = vmov 0   ;;  %s865_s0 = inlined_call_operand.vmem [shape: f32[128,32], index: 0, kind: input, shape index: {}]   ;;  %s866_s1 = inlined_call_operand.vmem [shape: f32[32,32], index: 1, kind: input, shape index: {}]   ;;  %s867_s2 = inlined_call_operand.vmem [shape: f32[32,1], index: 2, kind: input, shape index: {}]   ;;  %s868_s3 = inlined_call_operand.vmem [shape: f32[32,32], index: 3, kind: input, shape index: {}]   ;;  %s869_s4 = inlined_call_operand.vmem [shape: f32[32,1], index: 4, kind: input, shape index: {}]   ;;  %s870_s5 = inlined_call_operand.vmem [shape: f32[8,32], index: 5, kind: input, shape index: {}]   ;;  %s871_s6 = inlined_call_operand.vmem [shape: f32[8,1], index: 6, kind: input, shape index: {}]   ;;  %s872_s7 = inlined_call_operand.hbm [shape: f32[8,128], index: 7, kind: output, shape index: {}]  }
   0x1   :  { %v27_v0 = vld [vmem:[%s865_s0] sm:$0xff]  ;;  %v28_v1 = vld [vmem:[%s865_s0 + $0x8] sm:$0xff]  ;;  %v29_v2 = vld [vmem:[%s865_s0 + $0x10] sm:$0xff]  ;;  %633 = vset.pattern.permute.xlu0 %v659_v6  ;;  %634 = vset.pattern.permute.xlu1 %v659_v6 }
   0x2   :  { %v566_v3 = vpack.c.bf16 %v28_v1, %v27_v0  ;;  %vm715_vm1 = vmpackc.low %vm71_vm0, %vm71_vm0  ;;  %v30_v5 = vld [vmem:[%s865_s0 + $0x18] sm:$0xff]  ;;  %v43_v8 = vld [vmem:[%s866_s1] sm:$0xff] }
   0x3   :  { %v572_v7 = vpack.c.bf16 %v30_v5, %v29_v2  ;;  %v31_v9 = vld [vmem:[%s865_s0 + $0x20] sm:$0xff]  ;;  %v32_v10 = vld [vmem:[%s865_s0 + $0x28] sm:$0xff]  ;;  %535 = vmatprep.mubr.msk.f32.mxu0 %vm71_vm0, %v43_v8  ;;  %v49_v12 = vld [vmem:[%s867_s2 + $0x10] sm:$0xff] }
   0x4   :  { %568 = vmatprep.subr.msk.bf16.mxu0 %vm715_vm1, %v566_v3  ;;  %v47_v11 = vld [vmem:[%s867_s2] sm:$0xff]  ;;  %63 = vperm.xlu1 %634, %v49_v12   ;;  %v578_v13 = vpack.c.bf16 %v32_v10, %v31_v9  ;;  %v48_v14 = vld [vmem:[%s867_s2 + $0x8] sm:$0xff]  ;;  %v50_v15 = vld [vmem:[%s867_s2 + $0x18] sm:$0xff] }
   0x5   :  { %571 = vmatpush3.bf16.xpose.msk.msra.mxu0 %vm715_vm1, %v566_v3  ;;  %53 = vperm.xlu0 %633, %v47_v11  }
   0x6   :  { %574 = vmatprep.subr.msk.bf16.mxu0 %vm715_vm1, %v572_v7 }
   0x7   :  { %12 = vsyncpa [#allocation3], 0  ;;  %v225_v16 = vld [vmem:[%s869_s4] sm:$0xff]  ;;  %v33_v17 = vld [vmem:[%s865_s0 + $0x30] sm:$0xff]  ;;  %v660_v61 = vmov 0.0|0.0   ;;  %vm661_vm2 = vmmov 0  }
   0x8   :  { %68 = vperm.xlu1 %634, %v50_v15   ;;  %v34_v18 = vld [vmem:[%s865_s0 + $0x38] sm:$0xff]  ;;  %v226_v19 = vld [vmem:[%s869_s4 + $0x8] sm:$0xff]  ;;  %v227_v21 = vld [vmem:[%s869_s4 + $0x10] sm:$0xff]  ;;  %v662_v62 = vmov 0.0   ;;  %s663_s16 = smov [#allocation2]  }
   0x9   :  { %58 = vperm.xlu0 %633, %v48_v14   ;;  %v584_v20 = vpack.c.bf16 %v34_v18, %v33_v17  ;;  %v228_v22 = vld [vmem:[%s869_s4 + $0x18] sm:$0xff]  ;;  %v351_v23 = vld [vmem:[%s871_s6] sm:$0xff]  ;;  %v36_v25 = vld [vmem:[%s865_s0 + $0x48] sm:$0xff]  ;;  %s437_s4 = sshll.u32 %s663_s16, 4  ;;  %s438_s4 = int_to_ptr.vmem [resolvable:$true] %s437_s4 }
   0xa   :  { %v35_v24 = vld [vmem:[%s865_s0 + $0x40] sm:$0xff]  ;;  %v37_v27 = vld [vmem:[%s865_s0 + $0x50] sm:$0xff]  ;;  %v38_v28 = vld [vmem:[%s865_s0 + $0x58] sm:$0xff]  ;;  %s635_s17 = scalar_lea.vmem %s438_s4, 128  ;;  %p640_p1 = scmp.lt.s32.totalorder %s438_s4, %s438_s4 }
   0xb   :  { %v590_v26 = vpack.c.bf16 %v36_v25, %v35_v24  ;;  %v596_v29 = vpack.c.bf16 %v38_v28, %v37_v27  ;;  %v39_v30 = vld [vmem:[%s865_s0 + $0x60] sm:$0xff]  ;;  %v40_v31 = vld [vmem:[%s865_s0 + $0x68] sm:$0xff]  ;;  %v41_v33 = vld [vmem:[%s865_s0 + $0x70] sm:$0xff]  ;;  %p636_p0 = scmp.ne.s32.totalorder %s438_s4, %s635_s17  ;;  %p641_p2 = scmp.lt.s32.totalorder %s635_s17, %s635_s17 }
   0xc   :  { %236 = vperm.xlu1 %634, %v226_v19   ;;  %v602_v32 = vpack.c.bf16 %v40_v31, %v39_v30  ;;  %v42_v34 = vld [vmem:[%s865_s0 + $0x78] sm:$0xff]  ;;  %v44_v36 = vld [vmem:[%s866_s1 + $0x8] sm:$0xff]  ;;  %v45_v37 = vld [vmem:[%s866_s1 + $0x10] sm:$0xff] }
   0xd   :  { %577 = vmatpush3.bf16.xpose.msk.msra.mxu0 %vm715_vm1, %v572_v7  ;;  %231 = vperm.xlu0 %633, %v225_v16   ;;  %v608_v35 = vpack.c.bf16 %v42_v34, %v41_v33  ;;  %v46_v38 = vld [vmem:[%s866_s1 + $0x18] sm:$0xff]  ;;  %v221_v39 = vld [vmem:[%s868_s3] sm:$0xff]  ;;  %v222_v58 = vld [vmem:[%s868_s3 + $0x8] sm:$0xff]  ;;  %p642_p3 = por %p641_p2, %p640_p1 }
   0xe   :  { %580 = vmatprep.subr.msk.bf16.mxu0 %vm715_vm1, %v578_v13  ;;  %549 = vmatprep.mubr.msk.f32.mxu1 %vm71_vm0, %v221_v39  ;;  %v223_v59 = vld [vmem:[%s868_s3 + $0x10] sm:$0xff]  ;;  %v224_v60 = vld [vmem:[%s868_s3 + $0x18] sm:$0xff]  ;;  %v350_v17 = vld [vmem:[%s870_s5] sm:$0xff] }
   0xf   :  { %p643_p4 = pnand %p642_p3, %p636_p0 }
  0x10   :  { %246 = vperm.xlu1 %634, %v228_v22  }
  0x11   :  { %241 = vperm.xlu0 %633, %v227_v21  }
  0x15   :  { %583 = vmatpush3.bf16.xpose.msk.msra.mxu0 %vm715_vm1, %v578_v13  ;;  %354 = vperm.xlu0 %633, %v351_v23  }
  0x16   :  { %586 = vmatprep.subr.msk.bf16.mxu0 %vm715_vm1, %v584_v20 }
  0x1d   :  { %589 = vmatpush3.bf16.xpose.msk.msra.mxu0 %vm715_vm1, %v584_v20 }
  0x1e   :  { %592 = vmatprep.subr.msk.bf16.mxu0 %vm715_vm1, %v590_v26 }
  0x25   :  { %595 = vmatpush3.bf16.xpose.msk.msra.mxu0 %vm715_vm1, %v590_v26 }
  0x26   :  { %598 = vmatprep.subr.msk.bf16.mxu0 %vm715_vm1, %v596_v29 }
  0x2d   :  { %601 = vmatpush3.bf16.xpose.msk.msra.mxu0 %vm715_vm1, %v596_v29 }
  0x2e   :  { %604 = vmatprep.subr.msk.bf16.mxu0 %vm715_vm1, %v602_v32 }
  0x35   :  { %607 = vmatpush3.bf16.xpose.msk.msra.mxu0 %vm715_vm1, %v602_v32 }
  0x36   :  { %610 = vmatprep.subr.msk.bf16.mxu0 %vm715_vm1, %v608_v35 }
  0x3d   :  { %613 = vmatpush3.bf16.xpose.msk.msra.mxu0 %vm715_vm1, %v608_v35 }
  0x44   :  { %536 = vmatmul.mubr.msk.f32.vlgmr.msra.gmra.mrb[0].mxu0 %vm71_vm0, %v44_v36 }
  0x45   :  { %538 = vmatprep.mubr.msk.f32.mxu0 %vm71_vm0, %v45_v37 }
  0x48   :  { %539 = vmatmul.mubr.msk.f32.gmra.mrb[2].mxu0 %vm71_vm0, %v46_v38 }
  0x83   :  { %v64_v41 = vpop.permute.xlu1 %63 }
  0x84   :  { %v54_v40 = vpop.permute.xlu0 %53 }
  0x87   :  { %v69_v48 = vpop.permute.xlu1 %68 }
  0x88   :  { %v59_v42 = vpop.permute.xlu0 %58 }
  0x8b   :  { %v237_v63 = vpop.permute.xlu1 %236 }
  0x8c   :  { %v232_v0 = vpop.permute.xlu0 %231 }
  0x8f   :  { %v247_v6 = vpop.permute.xlu1 %246 }
  0x90   :  { %v242_v9 = vpop.permute.xlu0 %241 }
  0x94   :  { %v355_v18 = vpop.permute.xlu0 %354 }
 0x117   :  { %v537_v43 = vpop.f32.mrb[0].mxu0 }
 0x118   :  { %v204_v44 = vadd.f32 %v537_v43, %v59_v42  ;;  %v198_v45 = vpop.f32.mrb[1].mxu0 }
 0x119   :  { %v199_v46 = vadd.f32 %v198_v45, %v54_v40 }
 0x11a   :  { %v218_v47 = vmax.f32 %v204_v44, 0.0 }
 0x11b   :  { %v217_v49 = vmax.f32 %v199_v46, 0.0  ;;  %v540_v50 = vpop.f32.mrb[2].mxu0 }
 0x11c   :  { %v214_v51 = vadd.f32 %v540_v50, %v69_v48  ;;  %v208_v52 = vpop.f32.mrb[3].mxu0 }
 0x11d   :  { %v209_v53 = vadd.f32 %v208_v52, %v64_v41  ;;  %v614_v54 = vpack.c.bf16 %v218_v47, %v217_v49 }
 0x11e   :  { %v220_v55 = vmax.f32 %v214_v51, 0.0 }
 0x11f   :  { %v219_v56 = vmax.f32 %v209_v53, 0.0  ;;  %615 = vmatprep.subr.bf16.mxu1 %v614_v54 }
 0x120   :  { %617 = vmatpush3.bf16.msra.mxu1 %v614_v54 }
 0x121   :  { %v618_v57 = vpack.c.bf16 %v220_v55, %v219_v56 }
 0x123   :  { %619 = vmatprep.subr.bf16.mxu1 %v618_v57 }
 0x124   :  { %621 = vmatpush3.bf16.msra.mxu1 %v618_v57 }
 0x125   :  { %622 = vmatprep.subr.bf16.mxu1 %v660_v61 }
 0x127   :  { %550 = vmatmul.mubr.msk.f32.vlgmr.msra.gmra.mrb[0].mxu1 %vm71_vm0, %v222_v58 }
 0x128   :  { %552 = vmatprep.mubr.msk.f32.mxu1 %vm71_vm0, %v223_v59 }
 0x12b   :  { %553 = vmatmul.mubr.msk.f32.gmra.mrb[2].mxu1 %vm71_vm0, %v224_v60 }
 0x12c   :  { %563 = vmatprep.mubr.msk.f32.mxu1 %vm661_vm2, %v662_v62 }
 0x1fa   :  { %v551_v1 = vpop.f32.mrb[0].mxu1 }
 0x1fb   :  { %v333_v2 = vadd.f32 %v551_v1, %v237_v63  ;;  %v327_v3 = vpop.f32.mrb[1].mxu1 }
 0x1fc   :  { %v328_v4 = vadd.f32 %v327_v3, %v232_v0 }
 0x1fd   :  { %v347_v5 = vmax.f32 %v333_v2, 0.0 }
 0x1fe   :  { %v346_v7 = vmax.f32 %v328_v4, 0.0  ;;  %v554_v8 = vpop.f32.mrb[2].mxu1 }
 0x1ff   :  { %v343_v10 = vadd.f32 %v554_v8, %v247_v6  ;;  %v337_v11 = vpop.f32.mrb[3].mxu1 }
 0x200   :  { %v623_v12 = vpack.c.bf16 %v347_v5, %v346_v7  ;;  %v338_v13 = vadd.f32 %v337_v11, %v242_v9 }
 0x201   :  { %v349_v14 = vmax.f32 %v343_v10, 0.0 }
 0x202   :  { %v348_v15 = vmax.f32 %v338_v13, 0.0  ;;  %624 = vmatpush3.bf16.msra.mxu1 %v623_v12 }
 0x203   :  { %625 = vmatprep.subr.bf16.mxu1 %v660_v61 }
 0x204   :  { %v626_v16 = vpack.c.bf16 %v349_v14, %v348_v15 }
 0x206   :  { %627 = vmatpush3.bf16.msra.mxu1 %v626_v16 }
 0x209   :  { %564 = vmatmul.mubr.msk.f32.vlgmr.msra.gmra.mrb[4].mxu1 %vm71_vm0, %v350_v17 }
 0x2dc   :  { %v426_v19 = vpop.f32.mrb[4].mxu1 }
 0x2dd   :  { %v427_v20 = vadd.f32 %v426_v19, %v355_v18  ;;  %v565_v21 = vpop.f32.mrb[5].mxu1 }
 0x2df   :  { %430 = vst [vmem:[#allocation2] sm:$0xff] %v427_v20 }
 0x2e0   :  { %646 = shalt.err (!%p643_p4)
}
 0x2e1   :  { %s647_s5 = scalar_lea.hbm %s872_s7, 128 }
 0x2e2   :  { %p648_p5 = scmp.ne.s32.totalorder %s872_s7, %s647_s5  ;;  %p651_p6 = scmp.lt.u32.totalorder %s647_s5, %s872_s7 }
 0x2e4   :  { %p653_p7 = pnand %p651_p6, %p648_p5 }
 0x2e6   :  { %656 = shalt.err (!%p653_p7)
}
 0x2e7   :  { %440 = dma.vmem_to_hbm [thread:$0]  %s438_s4, 128, %s872_s7, [#allocation3]  }
 0x2e8   :  { %657 = dma.done.wait [#allocation3], 128  }
 0x2e9   :  { %658 = vsyncadd [#allocation3], 4294967168 }
 0x2ea   :  { %444 = vsyncpa [#allocation3], 1 }

</bundles_post_ra>
